<compile_context>
chip_gen: v6e
topology: v6e:2x2x1
jax: 0.10.0
libtpu: 0.0.40
codegen_flags: <defaults>
</compile_context>

<pallas_src>
import math

import jax
import jax.numpy as jnp
import numpy as np
from jax import lax
from jax.experimental import pallas as pl
from jax.experimental.pallas import tpu as pltpu


def _round_up(n, m):
    return (n + m - 1) // m * m


def _pick_tile_m(m_rows, target=512):
    """Row-tile size: multiple of 16 (bf16 sublane pack), capped at `target`,
    small enough to give >=2 grid steps (pipelining + both v7x TCs)."""
    if m_rows <= 32:
        return _round_up(max(m_rows, 16), 16)
    half = _round_up((m_rows + 1) // 2, 16)
    return min(target, half)


# ---------------------------------------------------------------------------
# Pallas kernel: one (tile_m, tile_n) output tile of  o = x_packed @ W + b
# ---------------------------------------------------------------------------

def _gemm_bias_kernel(x_ref, w_ref, b_ref, o_ref):
    # x_ref: (tile_m, Kp)   bf16  -- conv taps pre-packed along K
    # w_ref: (Kp, tile_n)   bf16  -- tap-stacked conv weight (resident)
    # b_ref: (1, tile_n)    f32
    # o_ref: (tile_m, tile_n)
    y = jnp.dot(x_ref[...], w_ref[...], preferred_element_type=jnp.float32)
    o_ref[...] = (y + b_ref[...]).astype(o_ref.dtype)


# ---------------------------------------------------------------------------
# Wrapper: weight_norm, tap packing, layout plumbing NCW <-> padded GEMM
# ---------------------------------------------------------------------------

def conv_forward(x_ncw, weight_v, weight_g, bias, *, dilation=1,
                 out_dtype=jnp.float32):
    """Forward of the PyTorch `Conv` module.

    x_ncw:    (B, Cin, T) float32
    weight_v: (Cout, Cin, ks) float32   (weight_norm "v")
    weight_g: (Cout,) float32           (weight_norm "g", per output channel)
    bias:     (Cout,) float32
    returns   (B, Cout, T) out_dtype
    """
    B, Cin, T = x_ncw.shape
    Cout, _, ks = weight_v.shape
    d = int(dilation)
    if ks % 2 != 1:
        raise ValueError("only odd kernel_size gives exact 'same' padding")
    half = (ks - 1) // 2
    if d < 1 or d * half >= T:
        # static guard: shift/pack logic assumes the taps overlap the sequence
        raise ValueError(f"dilation*{half}={d*half} must be < T={T}")

    # ---- weight_norm: w = g * v / ||v||  (norm over (Cin, ks) per out chan) ----
    vnorm = jnp.sqrt(jnp.sum(weight_v.astype(jnp.float32) ** 2,
                             axis=(1, 2), keepdims=True))
    weight = weight_g.reshape(Cout, 1, 1) * weight_v / vnorm      # (Cout, Cin, ks)

    K = ks * Cin
    Kp = _round_up(K, 128)
    Cout_p = _round_up(Cout, 128)

    # ---- activations: channels-last bf16, taps packed along K ---------------
    # NOTE: at the module boundary the model would ideally keep channels-last
    # bf16 end-to-end so this transpose/cast is fused into the producer.
    xt = jnp.transpose(x_ncw.astype(jnp.bfloat16), (0, 2, 1))     # (B, T, Cin)

    def shifted(off):
        # s[b, t] = x[b, t + off] if 0 <= t+off < T else 0
        if off == 0:
            return xt
        z = jnp.zeros((B, abs(off), Cin), xt.dtype)
        if off > 0:
            return jnp.concatenate([xt[:, off:, :], z], axis=1)
        return jnp.concatenate([z, xt[:, :T + off, :]], axis=1)

    taps = [shifted((k - half) * d) for k in range(ks)]            # tap k -> x[t+(k-half)d]
    xk = jnp.concatenate(taps, axis=-1)                            # (B, T, ks*Cin)

    M = B * T
    tile_m = _pick_tile_m(M)
    Mp = _round_up(M, tile_m)
    xk = xk.reshape(M, K)
    xk = jnp.pad(xk, ((0, Mp - M), (0, Kp - K)))                   # (Mp, Kp) bf16

    # ---- weight: tap-major (ks*Cin, Cout), padded to (Kp, Cout_p), bf16 ------
    w = jnp.transpose(weight, (2, 1, 0)).reshape(K, Cout)
    w = jnp.pad(w, ((0, Kp - K), (0, Cout_p - Cout))).astype(jnp.bfloat16)
    b = jnp.pad(bias, (0, Cout_p - Cout)).reshape(1, Cout_p).astype(jnp.float32)

    tile_n = 256 if Cout_p % 256 == 0 else 128
    grid = (Mp // tile_m, Cout_p // tile_n)

    out_itemsize = jnp.dtype(out_dtype).itemsize
    # per-step VMEM working set (double-buffered inputs/outputs, resident W)
    vmem_bytes = (2 * tile_m * Kp * 2
                  + 2 * Kp * tile_n * 2
                  + 2 * tile_m * tile_n * out_itemsize
                  + 2 * tile_n * 4)
    vmem_limit = int(min(max(2 * vmem_bytes, 8 << 20), 32 << 20))

    cost = pl.CostEstimate(
        flops=2 * Mp * Kp * Cout_p,
        transcendentals=0,
        bytes_accessed=(Mp * Kp * 2 + Kp * Cout_p * 2 + Cout_p * 4
                        + Mp * Cout_p * out_itemsize),
    )

    out = pl.pallas_call(
        _gemm_bias_kernel,
        out_shape=jax.ShapeDtypeStruct((Mp, Cout_p), out_dtype),
        grid=grid,
        in_specs=[
            pl.BlockSpec((tile_m, Kp), lambda i, j: (i, 0)),       # packed taps
            pl.BlockSpec((Kp, tile_n), lambda i, j: (0, j)),       # W (resident)
            pl.BlockSpec((1, tile_n), lambda i, j: (0, j)),        # bias
        ],
        out_specs=pl.BlockSpec((tile_m, tile_n), lambda i, j: (i, j)),
        compiler_params=pltpu.CompilerParams(
            dimension_semantics=("parallel", "parallel"),
            vmem_limit_bytes=vmem_limit,
        ),
        cost_estimate=cost,
    )(xk, w, b)

    # drop row/channel padding, back to NCW (module interface).
    # TODO(synk): in production keep channels-last (and bf16) downstream to
    # avoid this extra HBM transpose pass.
    out = out[:M, :Cout].reshape(B, T, Cout)
    return jnp.transpose(out, (0, 2, 1))


# ---------------------------------------------------------------------------

if __name__ == "__main__":
    # small shapes consistent with the module (Conv1d, kernel_size=3)
    B, Cin, Cout, T, ks, dilation = 2, 32, 64, 48, 3, 2

    key = jax.random.PRNGKey(0)
    kx, kv, kg, kb = jax.random.split(key, 4)

    x = jax.random.normal(kx, (B, Cin, T), jnp.float32)

    fan_in = Cin * ks
    weight_v = jax.random.normal(kv, (Cout, Cin, ks), jnp.float32) * math.sqrt(2.0 / fan_in)
    weight_g = jax.random.uniform(kg, (Cout,), jnp.float32, 0.5, 1.5)
    bound = 1.0 / math.sqrt(fan_in)
    bias = jax.random.uniform(kb, (Cout,), jnp.float32, -bound, bound)

    out = conv_forward(x, weight_v, weight_g, bias, dilation=dilation)
    out = jax.block_until_ready(out)
    assert out.shape == (B, Cout, T)

    # pure-JAX reference mirroring nn.Conv1d(kernel=3, dilation, padding=dilation)
    # with weight_norm applied.
    vnorm = jnp.sqrt(jnp.sum(weight_v ** 2, axis=(1, 2), keepdims=True))
    w_eff = weight_g.reshape(Cout, 1, 1) * weight_v / vnorm
    pad = dilation * (ks - 1) // 2
    ref = lax.conv_general_dilated(
        x, w_eff, window_strides=(1,), padding=[(pad, pad)],
        rhs_dilation=(dilation,), dimension_numbers=("NCH", "OIH", "NCH"))
    ref = ref + bias[None, :, None]

    np.testing.assert_allclose(np.asarray(out, dtype=np.float32), np.asarray(ref),
                               rtol=5e-2, atol=5e-2)
    print("KERNEL_OK")
</pallas_src>

<mosaic_0001>
module attributes {stable_mosaic.version = 11 : i64} {
  func.func @_gemm_bias_kernel(%arg0: i32, %arg1: i32, %arg2: memref<48x128xbf16, #tpu.memory_space<vmem>>, %arg3: memref<128x128xbf16, #tpu.memory_space<vmem>>, %arg4: memref<1x128xf32, #tpu.memory_space<vmem>>, %arg5: memref<48x128xf32, #tpu.memory_space<vmem>>) attributes {dimension_semantics = [#tpu.dimension_semantics<parallel>, #tpu.dimension_semantics<parallel>], iteration_bounds = array<i64: 2, 1>, scalar_prefetch = 0 : i64, scratch_operands = 0 : i64, tpu.core_type = #tpu.core_type<tc>, window_params = [{transform_indices = @transform_0, window_bounds = array<i64: 48, 128>}, {transform_indices = @transform_1, window_bounds = array<i64: 128, 128>}, {transform_indices = @transform_2, window_bounds = array<i64: 1, 128>}, {transform_indices = @transform_3, window_bounds = array<i64: 48, 128>}]} {
    %c0 = arith.constant 0 : index
    %c0_0 = arith.constant 0 : index
    %0 = vector.load %arg2[%c0, %c0_0] : memref<48x128xbf16, #tpu.memory_space<vmem>>, vector<48x128xbf16>
    %c0_1 = arith.constant 0 : index
    %c0_2 = arith.constant 0 : index
    %1 = vector.load %arg3[%c0_1, %c0_2] : memref<128x128xbf16, #tpu.memory_space<vmem>>, vector<128x128xbf16>
    %cst = arith.constant dense<0.000000e+00> : vector<48x128xf32>
    %2 = tpu.matmul %0, %1, %cst {dimension_numbers = #tpu.dot_dimension_numbers<[1], [0], [0], [1], [0, 0, 1, 1], [], []>} : vector<48x128xbf16>, vector<128x128xbf16>, vector<48x128xf32> -> vector<48x128xf32>
    %c0_3 = arith.constant 0 : index
    %c0_4 = arith.constant 0 : index
    %3 = vector.load %arg4[%c0_3, %c0_4] : memref<1x128xf32, #tpu.memory_space<vmem>>, vector<1x128xf32>
    %4 = vector.broadcast %3 : vector<1x128xf32> to vector<48x128xf32>
    %5 = arith.addf %2, %4 : vector<48x128xf32>
    %c0_5 = arith.constant 0 : index
    %c0_6 = arith.constant 0 : index
    %6 = vector.load %arg5[%c0_5, %c0_6] : memref<48x128xf32, #tpu.memory_space<vmem>>, vector<48x128xf32>
    tpu.vector_store %arg5[%c0_5, %c0_6], %5 {strides = array<i32>} : memref<48x128xf32, #tpu.memory_space<vmem>>, vector<48x128xf32>,
    return
  }
  func.func @transform_0(%arg0: i32, %arg1: i32) -> (i32, i32) {
    %c0_i32 = arith.constant 0 : i32
    %c0_i32_0 = arith.constant 0 : i32
    return %arg0, %c0_i32 : i32, i32
  }
  func.func @transform_1(%arg0: i32, %arg1: i32) -> (i32, i32) {
    %c0_i32 = arith.constant 0 : i32
    %c0_i32_0 = arith.constant 0 : i32
    return %c0_i32, %arg1 : i32, i32
  }
  func.func @transform_2(%arg0: i32, %arg1: i32) -> (i32, i32) {
    %c0_i32 = arith.constant 0 : i32
    %c0_i32_0 = arith.constant 0 : i32
    return %c0_i32, %arg1 : i32, i32
  }
  func.func @transform_3(%arg0: i32, %arg1: i32) -> (i32, i32) {
    %c0_i32 = arith.constant 0 : i32
    return %arg0, %arg1 : i32, i32
  }
}

</mosaic_0001>

<bundles_post_ra>
// kernel: tpu_custom_call.1
= control target key start
LH: loop header
LB: loop body
LE: loop exit
PB: predicated region body
PF: predicated region fallthrough
CT: control target
= control target key end

     0   :  { %8 = vsyncpa [#allocation3], 0  ;;  %s1058_s0 = inlined_call_operand.hbm [shape: bf16[96,128], index: 0, kind: input, shape index: {}]   ;;  %s1059_s1 = inlined_call_operand.hbm [shape: bf16[128,128], index: 1, kind: input, shape index: {}]   ;;  %s1060_s2 = inlined_call_operand.vmem [shape: f32[1,128], index: 2, kind: input, shape index: {}]   ;;  %s1061_s3 = inlined_call_operand.hbm [shape: f32[96,128], index: 3, kind: output, shape index: {}]  }
   0x1   :  { %10 = vsyncpa [#allocation3 + $0x1], 0 }
   0x2   :  { %11 = vsyncpa [#allocation6], 0 }
   0x3   :  { %12 = vsyncpa [#allocation4], 0 }
   0x4   :  { %14 = vsyncpa [#allocation4 + $0x1], 0  ;;  %s865_s12 = smov 0   ;;  %s867_s13 = smov 0  }
   0x5   :  { %s869_s14 = smov 0   ;;  %s871_s15 = smov 0  }
   0x6   :  { %s873_s16 = smov 0   ;;  %s875_s17 = smov 0  }
   0x7 LB: > { %s522_s18 = sadd.s32 4294967295, %s834_s17   ;;  %s523_s19 = sadd.s32 4294967294, %s834_s17   ;;  %s834_s17 = sphi %s875_s17, %s20_s17   ;;  %s830_s16 = sphi %s873_s16, %s1077_s16   ;;  %s826_s15 = sphi %s871_s15, %s1076_s15   ;;  %s822_s14 = sphi %s869_s14, %s1075_s14   ;;  %s818_s13 = sphi %s867_s13, %s1074_s13   ;;  %s814_s12 = sphi %s865_s12, %s1073_s12  }
   0x8   : > { %p52_p0 = scmp.ne.s32.totalorder %s818_s13, %s814_s12  ;;  %p899_p1 = scmp.eq.s32.totalorder %s522_s18, 0 }
   0x9   : > { %p903_p2 = scmp.eq.s32.totalorder %s522_s18, 1  ;;  %p136_p3 = scmp.eq.s32.totalorder %s523_s19, 1 }
   0xa   : > { %p909_p4 = por %p899_p1, %p52_p0  ;;  %p524_p5 = scmp.ge.s32.totalorder %s834_s17, 1 }
   0xb   : > { %p914_p6 = por %p136_p3, %p52_p0  ;;  %p143_p7 = scmp.lt.s32.totalorder %s834_s17, 3 }
   0xc   : > { %s1065_s22 = scalar_select %p909_p4, 1, 0 }
   0xd   : > { %s1066_s23 = scalar_select %p914_p6, 1, 0 }
   0xe   : > { %p919_p8 = pnand %p524_p5, %p143_p7  ;;  %s836_s25 = smov [#allocation5]  }
   0xf   : > { %s157_s26 = sshll.u32 %s836_s25, 4  ;;  %p527_p10 = scmp.ge.s32.totalorder %s834_s17, 2  ;;  %s158_s26 = int_to_ptr.vmem [resolvable:$true] %s157_s26 }
  0x10   : > { %p614_p9 = pneg %p919_p8  ;;  %s32_s28 = sadd.s32 1, %s830_s16 }
  0x11   : > { %s707_s29 = scalar_lea.vmem %s158_s26, 1024  ;;  %p715_p5 = scmp.lt.s32.totalorder %s158_s26, %s158_s26 }
  0x12   : > { %p928_p11 = pnand %p614_p9, %p899_p1  ;;  %p708_p13 = scmp.ne.s32.totalorder %s158_s26, %s707_s29 }
  0x13   : > { %p716_p7 = scmp.lt.s32.totalorder %s707_s29, %s707_s29 }
  0x14   : > { %p698_p12 = pneg %p928_p11 }
  0x15   : > { %p717_p6 = por %p716_p7, %p715_p5 }
  0x16   : > { %p710_p0 = pnand %p708_p13, %p698_p12 }
  0x18   : > { %p711_p3 = pneg %p710_p0 }
  0x1a   : > { %p718_p4 = pnand %p717_p6, %p711_p3 }
  0x1c   : > { %721 = shalt.err (!%p718_p4)
}
  0x1d   : > { %s837_s30 = smov 64   ;;  %s838_s4 = smov 4  }
  0x1e   : > { %617 = dma.hbm_to_vmem [thread:$0]  (!%p928_p11), %s1059_s1, 1024, %s158_s26, [#allocation6], %s837_s30, %s837_s30, %s838_s4  }
  0x1f   : > { %p34_p4 = scmp.ge.s32.totalorder %s32_s28, 2  ;;  %s39_s7 = sadd.s32 1, %s822_s14 }
  0x20   : > { %p46_p6 = scmp.ne.s32.totalorder %s822_s14, %s818_s13  ;;  %p47_p9 = scmp.eq.s32.totalorder %s834_s17, 0 }
  0x21   : > { %s1079_s28 = smov (%p34_p4, %s32_s28), 0  ;;  %p627_p0 = scmp.lt.s32.totalorder %s834_s17, 2 }
  0x22   : > { %p48_p12 = por %p47_p9, %p46_p6  ;;  %p951_p13 = por %p903_p2, %p46_p6 }
  0x23   : > { %s36_s9 = ssub.s32 %s830_s16, %s1079_s28  ;;  %s177_s10 = sand.u32 1, %s822_s14  }
  0x24   : > { %p37_p3 = scmp.eq.s32.totalorder %s36_s9, 0  ;;  %s603_s11 = smul.u32 24, %s177_s10 }
  0x25   : > { %s546_s19 = smul.u32 384, %s830_s16  ;;  %p963_p11 = pnand %p627_p0, %p48_p12 }
  0x26   : > { %s960_s18 = scalar_select %p37_p3, %s822_s14, %s39_s7  }
  0x27   : > { %s181_s25 = scalar_lea.vmem [#allocation2], %s603_s11  ;;  %s187_s5 = scalar_lea.hbm %s1058_s0, %s546_s19 }
  0x28   : > { %s188_s26 = sshll.u32 %s181_s25, 4  ;;  %s178_s6 = scalar_lea.sflag [#allocation3], %s177_s10  ;;  %s189_s26 = int_to_ptr.vmem [resolvable:$true] %s188_s26 }
  0x29   : > { %p724_p2 = pneg %p963_p11  ;;  %s735_s9 = scalar_lea.vmem %s189_s26, 384 }
  0x2a   : > { %p736_p5 = scmp.ne.s32.totalorder %s189_s26, %s735_s9  ;;  %s839_s7 = smov [#allocation2]  }
  0x2b   : > { %s740_s11 = sshll.u32 %s839_s7, 4  ;;  %s741_s11 = int_to_ptr.vmem [resolvable:$false] %s740_s11 }
  0x2c   : > { %p738_p7 = pnand %p736_p5, %p724_p2  ;;  %s742_s25 = scalar_lea.vmem %s741_s11, 768 }
  0x2d   : > { %p743_p6 = scmp.lt.s32.totalorder %s189_s26, %s741_s11  ;;  %p744_p9 = scmp.lt.s32.totalorder %s742_s25, %s735_s9 }
  0x2e   : > { %p739_p4 = pneg %p738_p7 }
  0x2f   : > { %p745_p12 = por %p744_p9, %p743_p6 }
  0x31   : > { %p746_p0 = pnand %p745_p12, %p739_p4 }
  0x33   : > { %749 = shalt.err (!%p746_p0)
}
  0x34   : > { %621 = dma.hbm_to_vmem [thread:$0]  (!%p963_p11), %s187_s5, 384, %s189_s26, %s178_s6, %s837_s30, %s837_s30, %s838_s4  }
  0x35   : > { %200 = sbr.rel (%p919_p8) target bundleno = 316 (0x13c), region = 32  ;;  %s980_s10 = sand.u32 (!%p919_p8), 1, %s818_s13  }
  0x36   : > { %s604_s19 = smul.u32 (!%p919_p8), 24, %s980_s10  ;;  %s203_s29 = scalar_lea.sflag (!%p919_p8), [#allocation3], %s980_s10 }
  0x37   : > { %p1071_p3 = scmp.ne.s32.totalorder (!%p919_p8), %s1065_s22, 0 }
  0x38   : > { %s984_s21 = scalar_lea.vmem (!%p919_p8), [#allocation2], %s604_s19 }
  0x3a   : > { %801 = dma.done.wait (%p1071_p3), %s203_s29, 384  }
  0x3b   : > { %803 = vsyncadd (%p1071_p3), %s203_s29, 4294966912 }
  0x3c   : > { %805 = dma.done.wait (%p899_p1), [#allocation6], 1024  }
  0x3d   : > { %807 = vsyncadd (%p899_p1), [#allocation6], 4294966272  ;;  %v840_v0 = vmov 0.0   ;;  %vm841_vm0 = vmmov 0   ;;  %v685_v1 = vld [vmem:[#allocation5 + $0x38] sm:$0xff]   ;;  %v686_v2 = vld [vmem:[#allocation5 + $0x30] sm:$0xff]  }
  0x3e   : > { %587 = vmatprep.subr.bf16.mxu1 %v840_v0  ;;  %559 = vmatprep.subr.bf16.mxu0 %v840_v0  ;;  %v687_v3 = vld [vmem:[#allocation5 + $0x28] sm:$0xff]   ;;  %v688_v4 = vld [vmem:[#allocation5 + $0x20] sm:$0xff]   ;;  %v689_v5 = vld [vmem:[#allocation5 + $0x18] sm:$0xff]   ;;  %s605_s20 = smul.u32 48, %s980_s10  ;;  %s401_s9 = scalar_lea.sflag [#allocation4], %s980_s10 }
  0x3f   : > { %579 = vmatprep.mubr.msk.bf16.mxu1 %vm841_vm0, %v840_v0  ;;  %575 = vmatprep.mubr.msk.bf16.mxu0 %vm841_vm0, %v840_v0  ;;  %v690_v6 = vld [vmem:[#allocation5 + $0x10] sm:$0xff]   ;;  %v691_v7 = vld [vmem:[#allocation5 + $0x8] sm:$0xff]   ;;  %v692_v8 = vld [vmem:[#allocation5] sm:$0xff]   ;;  %s547_s26 = smul.u32 768, %s826_s15  ;;  %s842_s15 = smov [#allocation7]  }
  0x40   : > { %595 = vmatpush3.bf16.msra.mxu1 %v685_v1  ;;  %560 = vmatpush3.bf16.msra.mxu0 %v685_v1  ;;  %v693_v9 = vld [vmem:[%s984_s21 + $0x8] sm:$0xff]   ;;  %v694_v10 = vld [vmem:[%s984_s21] sm:$0xff]   ;;  %v695_v11 = vld [vmem:[%s984_s21 + $0x10] sm:$0xff]   ;;  %s235_s30 = scalar_lea.vmem [#allocation7], %s605_s20  ;;  %s754_s11 = sshll.u32 %s842_s15, 4  ;;  %s755_s11 = int_to_ptr.vmem [resolvable:$false] %s754_s11 }
  0x41   : > { %588 = vmatprep.subr.bf16.mxu1 %v840_v0  ;;  %561 = vmatprep.subr.bf16.mxu0 %v840_v0  ;;  %v531_v12 = vld [vmem:[%s1060_s2] ss:$0 sm:$0xff]  ;;  %s415_s4 = sshll.u32 %s235_s30, 4  ;;  %s1010_s6 = scalar_lea.hbm %s1061_s3, %s547_s26  ;;  %s1005_s4 = int_to_ptr.vmem [resolvable:$true] %s415_s4 }
  0x42   : > { %s750_s7 = scalar_lea.vmem %s1005_s4, 768  ;;  %s756_s25 = scalar_lea.vmem %s755_s11, 1536 }
  0x43   : > { %p751_p1 = scmp.ne.s32.totalorder %s1005_s4, %s750_s7  ;;  %p757_p2 = scmp.lt.s32.totalorder %s1005_s4, %s755_s11 }
  0x44   : > { %596 = vmatpush3.bf16.msra.mxu1 %v686_v2  ;;  %562 = vmatpush3.bf16.msra.mxu0 %v686_v2  ;;  %p758_p5 = scmp.lt.s32.totalorder %s756_s25, %s750_s7 }
  0x45   : > { %589 = vmatprep.subr.bf16.mxu1 %v840_v0  ;;  %563 = vmatprep.subr.bf16.mxu0 %v840_v0  ;;  %p752_p8 = pnand %p751_p1, %p951_p13 }
  0x46   : > { %p759_p7 = por %p758_p5, %p757_p2 }
  0x47   : > { %p753_p11 = pneg %p752_p8 }
  0x48   : > { %597 = vmatpush3.bf16.msra.mxu1 %v687_v3  ;;  %564 = vmatpush3.bf16.msra.mxu0 %v687_v3 }
  0x49   : > { %590 = vmatprep.subr.bf16.mxu1 %v840_v0  ;;  %565 = vmatprep.subr.bf16.mxu0 %v840_v0  ;;  %p760_p4 = pnand %p759_p7, %p753_p11 }
  0x4c   : > { %598 = vmatpush3.bf16.msra.mxu1 %v688_v4  ;;  %566 = vmatpush3.bf16.msra.mxu0 %v688_v4 }
  0x4d   : > { %591 = vmatprep.subr.bf16.mxu1 %v840_v0  ;;  %567 = vmatprep.subr.bf16.mxu0 %v840_v0 }
  0x50   : > { %599 = vmatpush3.bf16.msra.mxu1 %v689_v5  ;;  %568 = vmatpush3.bf16.msra.mxu0 %v689_v5 }
  0x51   : > { %592 = vmatprep.subr.bf16.mxu1 %v840_v0  ;;  %569 = vmatprep.subr.bf16.mxu0 %v840_v0 }
  0x54   : > { %600 = vmatpush3.bf16.msra.mxu1 %v690_v6  ;;  %570 = vmatpush3.bf16.msra.mxu0 %v690_v6 }
  0x55   : > { %593 = vmatprep.subr.bf16.mxu1 %v840_v0  ;;  %571 = vmatprep.subr.bf16.mxu0 %v840_v0 }
  0x58   : > { %601 = vmatpush3.bf16.msra.mxu1 %v691_v7  ;;  %572 = vmatpush3.bf16.msra.mxu0 %v691_v7 }
  0x59   : > { %594 = vmatprep.subr.bf16.mxu1 %v840_v0  ;;  %573 = vmatprep.subr.bf16.mxu0 %v840_v0 }
  0x5c   : > { %602 = vmatpush3.bf16.msra.mxu1 %v692_v8  ;;  %574 = vmatpush3.bf16.msra.mxu0 %v692_v8 }
  0x5f   : > { %580 = vmatmul.mubr.bf16.vlgmr.msra.gmra.mxu1 %v693_v9  ;;  %576 = vmatmul.mubr.bf16.vlgmr.msra.gmra.mxu0 %v694_v10 }
  0x60   : > { %583 = vmatprep.mubr.msk.bf16.mxu1 %vm841_vm0, %v840_v0 }
  0x67   : > { %584 = vmatmul.mubr.bf16.gmra.mxu1 %v695_v11 }
 0x11f   : > { %v379_v13 = vpop.f32.mrf.mxu1  ;;  %v371_v14 = vpop.f32.mrf.mxu0 }
 0x120   : > { %v380_v15 = vadd.f32 %v531_v12, %v379_v13  ;;  %v372_v16 = vadd.f32 %v531_v12, %v371_v14 }
 0x121   : > { %v581_v17 = vpop.f32.mrf.mxu1  ;;  %v577_v18 = vpop.f32.mrf.mxu0 }
 0x122   : > { %396 = vst [vmem:[%s235_s30 + $0x10] sm:$0xff] %v380_v15  ;;  %394 = vst [vmem:[%s235_s30] sm:$0xff] %v372_v16 }
 0x123   : > { %v382_v19 = vpop.f32.mrf.mxu1  ;;  %v374_v20 = vpop.f32.mrf.mxu0 }
 0x124   : > { %v383_v21 = vadd.f32 %v531_v12, %v382_v19  ;;  %v375_v22 = vadd.f32 %v531_v12, %v374_v20 }
 0x125   : > { %v582_v23 = vpop.f32.mrf.mxu1  ;;  %v578_v24 = vpop.f32.mrf.mxu0 }
 0x126   : > { %397 = vst [vmem:[%s235_s30 + $0x18] sm:$0xff] %v383_v21  ;;  %395 = vst [vmem:[%s235_s30 + $0x8] sm:$0xff] %v375_v22 }
 0x127   : > { %v387_v25 = vpop.f32.mrf.mxu1 }
 0x128   : > { %v388_v26 = vadd.f32 %v531_v12, %v387_v25 }
 0x129   : > { %v585_v27 = vpop.f32.mrf.mxu1 }
 0x12a   : > { %398 = vst [vmem:[%s235_s30 + $0x20] sm:$0xff] %v388_v26 }
 0x12b   : > { %v390_v28 = vpop.f32.mrf.mxu1 }
 0x12c   : > { %v391_v29 = vadd.f32 %v531_v12, %v390_v28 }
 0x12d   : > { %v586_v30 = vpop.f32.mrf.mxu1 }
 0x12e   : > { %399 = vst [vmem:[%s235_s30 + $0x28] sm:$0xff] %v391_v29 }
 0x12f   : > { %763 = shalt.err (!%p760_p4)
}
 0x130   : > { %s764_s19 = scalar_lea.hbm %s1010_s6, 768  ;;  %s768_s20 = scalar_lea.hbm %s1061_s3, 1536 }
 0x131   : > { %p765_p6 = scmp.ne.s32.totalorder %s1010_s6, %s764_s19  ;;  %p769_p0 = scmp.lt.s32.totalorder %s1010_s6, %s1061_s3 }
 0x132   : > { %p770_p3 = scmp.lt.s32.totalorder %s768_s20, %s764_s19 }
 0x133   : > { %p766_p9 = pnand %p765_p6, %p951_p13 }
 0x134   : > { %p771_p1 = por %p770_p3, %p769_p0 }
 0x135   : > { %p767_p12 = pneg %p766_p9 }
 0x137   : > { %p772_p8 = pnand %p771_p1, %p767_p12 }
 0x139   : > { %775 = shalt.err (!%p772_p8)
}
 0x13a   : > { %s843_s30 = smov 128   ;;  %s844_s26 = smov 8  }
 0x13b   : > { %612 = dma.vmem_to_hbm [thread:$0]  (%p951_p13), %s1005_s4, 768, %s1010_s6, %s401_s9, %s843_s30, %s843_s30, %s844_s26  }
 0x13c PF: > { %s430_s27 = sand.u32 1, %s814_s12   ;;  %p1072_p11 = scmp.ne.s32.totalorder %s1066_s23, 0 }
 0x13d   : > { %s431_s5 = scalar_lea.sflag [#allocation4], %s430_s27 }
 0x13e   : > { %p623_p2 = pnand %p527_p10, %p1072_p11 }
 0x140   : > { %p624_p5 = pneg %p623_p2 }
 0x142   : > { %809 = dma.done.wait (%p624_p5), %s431_s5, 768  }
 0x143   : > { %811 = vsyncadd (%p624_p5), %s431_s5, 4294966528  ;;  %s20_s17 = sadd.s32 1, %s834_s17   ;;  %s1073_s12 = smov %s818_s13 }
 0x144   : > { %p17_p7 = scmp.ge.s32.totalorder %s20_s17, 4   ;;  %s1074_s13 = smov %s822_s14 }
 0x145   : > { %s1075_s14 = smov %s960_s18  ;;  %s1076_s15 = smov %s830_s16 }
 0x146   : > { %s1077_s16 = smov %s1079_s28  ;;  %19 = sbr.rel (!%p17_p7) target bundleno = 7 (0x7), region = 85 }
 0x14b   :  { %436 = vsyncpa [#allocation3], 1 }
 0x14c   :  { %438 = vsyncpa [#allocation3 + $0x1], 1 }
 0x14d   :  { %439 = vsyncpa [#allocation6], 1 }
 0x14e   :  { %440 = vsyncpa [#allocation4], 1 }
 0x14f   :  { %442 = vsyncpa [#allocation4 + $0x1], 1 }

</bundles_post_ra>
